<compile_context>
chip_gen: v7x
topology: tpu7x:2x2x1
jax: 0.10.0
libtpu: 0.0.40
codegen_flags: <defaults>
</compile_context>

<pallas_src>
import jax
import jax.numpy as jnp
from jax.experimental import pallas as pl
from jax.experimental.pallas import tpu as pltpu


def actor_kernel(x_ref, w1_ref, b1_ref, w23_ref, b23_ref, out_ref):
    # Hidden layer: MXU matmul, EUP tanh, f32 throughout.
    h = jnp.tanh(
        jnp.dot(x_ref[...], w1_ref[...], preferred_element_type=jnp.float32)
        + b1_ref[...]
    )
    # Fused mu/logvar head: single MXU matmul into a lane-dense 128-wide slab.
    out_ref[...] = (
        jnp.dot(h, w23_ref[...], preferred_element_type=jnp.float32) + b23_ref[...]
    ).astype(out_ref.dtype)


def _round_up(v, m):
    return ((v + m - 1) // m) * m


def actor_forward(x, params):
    """x: (B, state_dim) float32. params: dict of pre-transposed weights/biases.

    Returns (mu, logvar), each (B, action_dim) float32.
    """
    w1, b1, w2, b2, w3, b3 = (params[k] for k in ("w1", "b1", "w2", "b2", "w3", "b3"))
    B, state_dim = x.shape
    hidden_dim = w1.shape[1]
    action_dim = w2.shape[1]
    two_a = 2 * action_dim

    # --- Fuse the two heads and pad the output feature dim to 128 lanes. ---
    out_pad = max(128, _round_up(two_a, 128))
    w23 = (
        jnp.zeros((hidden_dim, out_pad), jnp.float32)
        .at[:, :action_dim].set(w2)
        .at[:, action_dim:two_a].set(w3)
    )
    b23 = (
        jnp.zeros((1, out_pad), jnp.float32)
        .at[:, :action_dim].set(b1.dtype.type(0) + b2[0])
        .at[:, action_dim:two_a].set(b3[0])
    )

    # --- Batch tiling: big tiles when the batch is big, tiny (8-aligned) tile
    #     for small batches so we don't pad a B=2 call up to 512 rows. ---
    if B >= 512:
        tile_b = 512
    else:
        tile_b = _round_up(max(B, 1), 8)
    b_pad = _round_up(B, tile_b)
    x_p = x if b_pad == B else jnp.pad(x, ((0, b_pad - B), (0, 0)))
    grid = (b_pad // tile_b,)

    out = pl.pallas_call(
        actor_kernel,
        out_shape=jax.ShapeDtypeStruct((b_pad, out_pad), jnp.float32),
        grid=grid,
        in_specs=[
            # x: one batch tile per grid step (double-buffered by the pipeline).
            pl.BlockSpec((tile_b, state_dim), lambda i: (i, 0)),
            # Weights / biases: constant block index -> stay VMEM-resident.
            pl.BlockSpec((state_dim, hidden_dim), lambda i: (0, 0)),
            pl.BlockSpec((1, hidden_dim), lambda i: (0, 0)),
            pl.BlockSpec((hidden_dim, out_pad), lambda i: (0, 0)),
            pl.BlockSpec((1, out_pad), lambda i: (0, 0)),
        ],
        out_specs=pl.BlockSpec((tile_b, out_pad), lambda i: (i, 0)),
        compiler_params=pltpu.CompilerParams(
            dimension_semantics=("parallel",),  # lets v7x shard across its 2 TCs
        ),
    )(x_p, w1, b1, w23, b23)

    mu = out[:B, :action_dim]
    logvar = out[:B, action_dim:two_a]
    return mu, logvar


def init_actor_params(key, state_dim, hidden_dim, action_dim):
    """Deterministic init mimicking nn.Linear default (U[-1/sqrt(fan_in), 1/sqrt(fan_in)]),
    with the PyTorch module's post-init: action_head.weight *= 0.1, bias *= 0.0."""
    k = jax.random.split(key, 6)

    def linear(kw, kb, fan_in, fan_out):
        bound = 1.0 / jnp.sqrt(fan_in)
        # stored as (in, out) == transpose of torch's (out, in)
        w = jax.random.uniform(kw, (fan_in, fan_out), jnp.float32, -bound, bound)
        b = jax.random.uniform(kb, (1, fan_out), jnp.float32, -bound, bound)
        return w, b

    w1, b1 = linear(k[0], k[1], state_dim, hidden_dim)
    w2, b2 = linear(k[2], k[3], hidden_dim, action_dim)
    w3, b3 = linear(k[4], k[5], hidden_dim, action_dim)
    # __action_head.weight.data.mul_(0.1); bias.data.mul_(0.0)
    w2 = w2 * 0.1
    b2 = b2 * 0.0
    return dict(w1=w1, b1=b1, w2=w2, b2=b2, w3=w3, b3=b3)


def _reference(x, params):
    h = jnp.tanh(x @ params["w1"] + params["b1"])
    mu = h @ params["w2"] + params["b2"]
    lv = h @ params["w3"] + params["b3"]
    return mu, lv


if __name__ == "__main__":
    key = jax.random.PRNGKey(0)
    state_dim, hidden_dim, action_dim = 4, 32, 4

    kx, kp, kx2 = jax.random.split(key, 3)
    params = init_actor_params(kp, state_dim, hidden_dim, action_dim)

    # Small-batch path (single grid step, batch padded to 8 sublanes).
    batch = 2
    x = jax.random.normal(kx, (batch, state_dim), jnp.float32)
    mu, logvar = actor_forward(x, params)
    jax.block_until_ready((mu, logvar))

    mu_ref, lv_ref = _reference(x, params)
    assert mu.shape == (batch, action_dim) and logvar.shape == (batch, action_dim)
    assert jnp.allclose(mu, mu_ref, atol=1e-5), "mu mismatch (small batch)"
    assert jnp.allclose(logvar, lv_ref, atol=1e-5), "logvar mismatch (small batch)"

    # Larger ragged batch exercises the tiled grid + padding path.
    batch2 = 1030
    x2 = jax.random.normal(kx2, (batch2, state_dim), jnp.float32)
    mu2, logvar2 = actor_forward(x2, params)
    jax.block_until_ready((mu2, logvar2))

    mu2_ref, lv2_ref = _reference(x2, params)
    assert mu2.shape == (batch2, action_dim) and logvar2.shape == (batch2, action_dim)
    assert jnp.allclose(mu2, mu2_ref, atol=1e-5), "mu mismatch (tiled batch)"
    assert jnp.allclose(logvar2, lv2_ref, atol=1e-5), "logvar mismatch (tiled batch)"

    print("KERNEL_OK")
</pallas_src>

<mosaic_0001>
module attributes {stable_mosaic.version = 11 : i64} {
  func.func @actor_kernel(%arg0: i32, %arg1: memref<8x4xf32, #tpu.memory_space<vmem>>, %arg2: memref<4x32xf32, #tpu.memory_space<vmem>>, %arg3: memref<1x32xf32, #tpu.memory_space<vmem>>, %arg4: memref<32x128xf32, #tpu.memory_space<vmem>>, %arg5: memref<1x128xf32, #tpu.memory_space<vmem>>, %arg6: memref<8x128xf32, #tpu.memory_space<vmem>>) attributes {dimension_semantics = [#tpu.dimension_semantics<parallel>], iteration_bounds = array<i64: 1>, scalar_prefetch = 0 : i64, scratch_operands = 0 : i64, tpu.core_type = #tpu.core_type<tc>, window_params = [{transform_indices = @transform_0, window_bounds = array<i64: 8, 4>}, {pipeline_mode = #tpu.pipeline_mode<synchronous>, transform_indices = @transform_1, window_bounds = array<i64: 4, 32>}, {pipeline_mode = #tpu.pipeline_mode<synchronous>, transform_indices = @transform_2, window_bounds = array<i64: 1, 32>}, {pipeline_mode = #tpu.pipeline_mode<synchronous>, transform_indices = @transform_3, window_bounds = array<i64: 32, 128>}, {pipeline_mode = #tpu.pipeline_mode<synchronous>, transform_indices = @transform_4, window_bounds = array<i64: 1, 128>}, {transform_indices = @transform_5, window_bounds = array<i64: 8, 128>}]} {
    %c0 = arith.constant 0 : index
    %c0_0 = arith.constant 0 : index
    %0 = vector.load %arg1[%c0, %c0_0] : memref<8x4xf32, #tpu.memory_space<vmem>>, vector<8x4xf32>
    %c0_1 = arith.constant 0 : index
    %c0_2 = arith.constant 0 : index
    %1 = vector.load %arg2[%c0_1, %c0_2] : memref<4x32xf32, #tpu.memory_space<vmem>>, vector<4x32xf32>
    %cst = arith.constant dense<0.000000e+00> : vector<8x32xf32>
    %2 = tpu.matmul %0, %1, %cst {dimension_numbers = #tpu.dot_dimension_numbers<[1], [0], [0], [1], [0, 0, 1, 1], [], []>} : vector<8x4xf32>, vector<4x32xf32>, vector<8x32xf32> -> vector<8x32xf32>
    %c0_3 = arith.constant 0 : index
    %c0_4 = arith.constant 0 : index
    %3 = vector.load %arg3[%c0_3, %c0_4] : memref<1x32xf32, #tpu.memory_space<vmem>>, vector<1x32xf32>
    %4 = vector.broadcast %3 : vector<1x32xf32> to vector<8x32xf32>
    %5 = arith.addf %2, %4 : vector<8x32xf32>
    %6 = math.tanh %5 : vector<8x32xf32>
    %c0_5 = arith.constant 0 : index
    %c0_6 = arith.constant 0 : index
    %7 = vector.load %arg4[%c0_5, %c0_6] : memref<32x128xf32, #tpu.memory_space<vmem>>, vector<32x128xf32>
    %cst_7 = arith.constant dense<0.000000e+00> : vector<8x128xf32>
    %8 = tpu.matmul %6, %7, %cst_7 {dimension_numbers = #tpu.dot_dimension_numbers<[1], [0], [0], [1], [0, 0, 1, 1], [], []>} : vector<8x32xf32>, vector<32x128xf32>, vector<8x128xf32> -> vector<8x128xf32>
    %c0_8 = arith.constant 0 : index
    %c0_9 = arith.constant 0 : index
    %9 = vector.load %arg5[%c0_8, %c0_9] : memref<1x128xf32, #tpu.memory_space<vmem>>, vector<1x128xf32>
    %10 = vector.broadcast %9 : vector<1x128xf32> to vector<8x128xf32>
    %11 = arith.addf %8, %10 : vector<8x128xf32>
    %c0_10 = arith.constant 0 : index
    %c0_11 = arith.constant 0 : index
    %12 = vector.load %arg6[%c0_10, %c0_11] : memref<8x128xf32, #tpu.memory_space<vmem>>, vector<8x128xf32>
    tpu.vector_store %arg6[%c0_10, %c0_11], %11 {strides = array<i32>} : memref<8x128xf32, #tpu.memory_space<vmem>>, vector<8x128xf32>,
    return
  }
  func.func @transform_0(%arg0: i32) -> (i32, i32) {
    %c0_i32 = arith.constant 0 : i32
    %c0_i32_0 = arith.constant 0 : i32
    return %arg0, %c0_i32 : i32, i32
  }
  func.func @transform_1(%arg0: i32) -> (i32, i32) {
    %c0_i32 = arith.constant 0 : i32
    %c0_i32_0 = arith.constant 0 : i32
    %c0_i32_1 = arith.constant 0 : i32
    return %c0_i32, %c0_i32_0 : i32, i32
  }
  func.func @transform_2(%arg0: i32) -> (i32, i32) {
    %c0_i32 = arith.constant 0 : i32
    %c0_i32_0 = arith.constant 0 : i32
    %c0_i32_1 = arith.constant 0 : i32
    return %c0_i32, %c0_i32_0 : i32, i32
  }
  func.func @transform_3(%arg0: i32) -> (i32, i32) {
    %c0_i32 = arith.constant 0 : i32
    %c0_i32_0 = arith.constant 0 : i32
    %c0_i32_1 = arith.constant 0 : i32
    return %c0_i32, %c0_i32_0 : i32, i32
  }
  func.func @transform_4(%arg0: i32) -> (i32, i32) {
    %c0_i32 = arith.constant 0 : i32
    %c0_i32_0 = arith.constant 0 : i32
    %c0_i32_1 = arith.constant 0 : i32
    return %c0_i32, %c0_i32_0 : i32, i32
  }
  func.func @transform_5(%arg0: i32) -> (i32, i32) {
    %c0_i32 = arith.constant 0 : i32
    %c0_i32_0 = arith.constant 0 : i32
    return %arg0, %c0_i32 : i32, i32
  }
}

</mosaic_0001>

<bundles_post_ra>
// kernel: tpu_custom_call.1
= control target key start
LH: loop header
LB: loop body
LE: loop exit
PB: predicated region body
PF: predicated region fallthrough
CT: control target
= control target key end

     0   :  { %10 = vsyncpa [#allocation3], 0  ;;  %s388_s0 = inlined_call_operand.vmem [shape: f32[8,4], index: 0, kind: input, shape index: {}]   ;;  %s389_s1 = inlined_call_operand.vmem [shape: f32[4,32], index: 1, kind: input, shape index: {}]   ;;  %s390_s2 = inlined_call_operand.vmem [shape: f32[1,32], index: 2, kind: input, shape index: {}]   ;;  %s391_s3 = inlined_call_operand.hbm [shape: f32[32,128], index: 3, kind: input, shape index: {}]   ;;  %s392_s4 = inlined_call_operand.vmem [shape: f32[1,128], index: 4, kind: input, shape index: {}]   ;;  %s393_s5 = inlined_call_operand.hbm [shape: f32[8,128], index: 5, kind: output, shape index: {}]  }
   0x1   :  { %11 = vsyncpa [#allocation4], 0  ;;  %s315_s18 = smov [#allocation2]   ;;  %s267_s22 = scalar_lea.hbm %s391_s3, 512 }
   0x2   :  { %s23_s19 = sshll.u32 %s315_s18, 4  ;;  %p268_p0 = scmp.ne.s32.totalorder %s391_s3, %s267_s22  ;;  %s24_s19 = int_to_ptr.vmem [resolvable:$true] %s23_s19 }
   0x3   :  { %p271_p1 = scmp.lt.u32.totalorder %s267_s22, %s391_s3 }
   0x5   :  { %p273_p2 = pnand %p271_p1, %p268_p0 }
   0x7   :  { %276 = shalt.err (!%p273_p2)
}
   0x8   :  { %s277_s27 = scalar_lea.vmem %s24_s19, 512  ;;  %p282_p4 = scmp.lt.s32.totalorder %s24_s19, %s24_s19 }
   0x9   :  { %p278_p3 = scmp.ne.s32.totalorder %s24_s19, %s277_s27  ;;  %p283_p5 = scmp.lt.s32.totalorder %s277_s27, %s277_s27 }
   0xb   :  { %p284_p6 = por %p283_p5, %p282_p4 }
   0xd   :  { %p285_p7 = pnand %p284_p6, %p278_p3 }
   0xf   :  { %288 = shalt.err (!%p285_p7)
}
  0x10   :  { %s316_s28 = smov 128   ;;  %s317_s29 = smov 8  }
  0x11   :  { %29 = dma.hbm_to_vmem [thread:$0]  %s391_s3, 512, %s24_s19, [#allocation3], %s316_s28, %s316_s28, %s317_s29  }
  0x12   :  { %311 = dma.done.wait [#allocation3], 512  }
  0x13   :  { %312 = vsyncadd [#allocation3], 4294966784  ;;  %v318_v0 = vmov 0.0   ;;  %vm319_vm0 = vmmov 0   ;;  %vm48_vm1 = vcmask 1043456   ;;  %vm44_vm2 = vcmask 31744  }
  0x14   :  { %236 = vmatprep.subr.mxu0 %v318_v0  ;;  %238 = vmatprep.mubr.msk.f32.mxu0 %vm319_vm0, %v318_v0  ;;  %v36_v1 = vld [vmem:[%s389_s1] sm:$0xf]  ;;  %v124_v4 = vld [vmem:[#allocation2 + $0x8] sm:$0xff]  ;;  %v125_v5 = vld [vmem:[#allocation2 + $0x10] sm:$0xff]  ;;  %v320_v6 = vmov 0.0|0.0   ;;  %vm134_vm3 = vcmask 261120  }
  0x15   :  { %249 = vmatprep.mubr.msk.f32.mxu1 %vm319_vm0, %v318_v0  ;;  %v35_v2 = vld [vmem:[%s388_s0] sm:$0xff]  ;;  %237 = vmatpush3.msk.msra.mxu0 %vm48_vm1, %v36_v1  ;;  %v126_v8 = vld [vmem:[#allocation2 + $0x18] sm:$0xff]  ;;  %s321_s12 = smov [#allocation5]  }
  0x16   :  { %239 = vmatmul.mubr.msk.f32.vlgmr.msra.gmra.mrb[0].mxu0 %vm44_vm2, %v35_v2  ;;  %v123_v3 = vld [vmem:[#allocation2] sm:$0xff]  ;;  %252 = vmatprep.subr.bf16.mxu1 %v320_v6  ;;  %v256_v9 = vpack.c.bf16 %v126_v8, %v125_v5  ;;  %s215_s13 = sshll.u32 %s321_s12, 4  ;;  %s216_s13 = int_to_ptr.vmem [resolvable:$true] %s215_s13 }
  0x17   :  { %v253_v7 = vpack.c.bf16 %v124_v4, %v123_v3  ;;  %v224_v10 = vld [vmem:[%s390_s2] ss:$0 sm:$0xff]  ;;  %s289_s14 = scalar_lea.vmem %s216_s13, 128  ;;  %p294_p9 = scmp.lt.s32.totalorder %s216_s13, %s216_s13 }
  0x18   :  { %v227_v15 = vld [vmem:[%s392_s4] ss:$0 sm:$0xff]  ;;  %p290_p8 = scmp.ne.s32.totalorder %s216_s13, %s289_s14  ;;  %p295_p10 = scmp.lt.s32.totalorder %s289_s14, %s289_s14 }
  0x19   :  { %254 = vmatpush3.bf16.msra.mxu1 %v253_v7 }
  0x1a   :  { %255 = vmatprep.subr.bf16.mxu1 %v320_v6  ;;  %p296_p11 = por %p295_p10, %p294_p9 }
  0x1c   :  { %p297_p12 = pnand %p296_p11, %p290_p8 }
  0x1d   :  { %257 = vmatpush3.bf16.msra.mxu1 %v256_v9 }
  0xe9   :  { %v118_v11 = vpop.f32.mrb[0].mxu0 }
  0xea   :  { %v119_v12 = vadd.f32 %v224_v10, %v118_v11  ;;  %v240_v13 = vpop.f32.mrb[1].mxu0 }
  0xec   :  { %265 = vtanh.f32 %v119_v12 }
  0xf6   :  { %v266_v14 = vpop.eup %265 }
  0xf7   :  { %250 = vmatmul.mubr.msk.f32.vlgmr.msra.gmra.mrb[0].mxu1 %vm134_vm3, %v266_v14 }
 0x1ca   :  { %v204_v16 = vpop.f32.mrb[0].mxu1 }
 0x1cb   :  { %v205_v17 = vadd.f32 %v227_v15, %v204_v16  ;;  %v251_v18 = vpop.f32.mrb[1].mxu1 }
 0x1cd   :  { %208 = vst [vmem:[#allocation5] sm:$0xff] %v205_v17 }
 0x1ce   :  { %300 = shalt.err (!%p297_p12)
}
 0x1cf   :  { %s301_s16 = scalar_lea.hbm %s393_s5, 128 }
 0x1d0   :  { %p302_p13 = scmp.ne.s32.totalorder %s393_s5, %s301_s16  ;;  %p305_p0 = scmp.lt.u32.totalorder %s301_s16, %s393_s5 }
 0x1d2   :  { %p307_p1 = pnand %p305_p0, %p302_p13 }
 0x1d4   :  { %310 = shalt.err (!%p307_p1)
}
 0x1d5   :  { %218 = dma.vmem_to_hbm [thread:$0]  %s216_s13, 128, %s393_s5, [#allocation4]  }
 0x1d6   :  { %313 = dma.done.wait [#allocation4], 128  }
 0x1d7   :  { %314 = vsyncadd [#allocation4], 4294967168 }
 0x1d8   :  { %222 = vsyncpa [#allocation3], 1 }
 0x1d9   :  { %223 = vsyncpa [#allocation4], 1 }

</bundles_post_ra>
